<compile_context>
chip_gen: v6e
topology: v6e:2x2x1
jax: 0.10.0
libtpu: 0.0.40
codegen_flags: <defaults>
</compile_context>

<pallas_src>
import functools

import jax
import jax.numpy as jnp
from jax.experimental import pallas as pl
from jax.experimental.pallas import tpu as pltpu

_LANES = 128
_SUBLANES = 8
_MAX_COLS = 4096                       # lane-dense slab width cap
_MAX_BLOCK_BYTES = 4 * 1024 * 1024     # per-array block target (~4 MiB)
_VMEM_LIMIT_BYTES = 48 * 1024 * 1024   # 3 arrays x 2 buffers x 4 MiB + headroom


def _shortcut_kernel(a_ref, b_ref, o_ref, *, activation, negative_slope):
    s = a_ref[...] + b_ref[...]
    if activation == "leaky":
        # max(s, slope*s) == LeakyReLU(s) for 0 < slope < 1 (one mul + one max).
        s = jnp.maximum(s, s * jnp.asarray(negative_slope, dtype=s.dtype))
    elif activation != "linear":
        raise ValueError(f"unsupported activation: {activation}")
    o_ref[...] = s


def _pick_cols(total):
    """Largest multiple of 128 (<= _MAX_COLS) dividing `total`; 0 if none."""
    hi = min(_MAX_COLS, (total // _LANES) * _LANES)
    c = hi
    while c >= _LANES:
        if total % c == 0:
            return c
        c -= _LANES
    return 0


def _pick_tile_rows(rows, cols, itemsize):
    """Rows per block: ~_MAX_BLOCK_BYTES, multiple of 8 (or the full extent)."""
    row_bytes = cols * itemsize
    max_rows = max(_SUBLANES, _MAX_BLOCK_BYTES // row_bytes)
    max_rows -= max_rows % _SUBLANES
    if rows <= max_rows:
        # One block covering the whole slab (block == full array dims is
        # always legal, regardless of (8,128) divisibility).
        return rows
    return max_rows


def _run_slab(a2d, b2d, activation, negative_slope):
    rows, cols = a2d.shape
    itemsize = jnp.dtype(a2d.dtype).itemsize
    tile_rows = _pick_tile_rows(rows, cols, itemsize)
    grid = (pl.cdiv(rows, tile_rows),)   # ragged last block is masked by Pallas

    total = rows * cols
    flops = total if activation == "linear" else 3 * total
    cost = pl.CostEstimate(
        flops=flops, transcendentals=0, bytes_accessed=3 * total * itemsize
    )

    kernel = functools.partial(
        _shortcut_kernel, activation=activation, negative_slope=negative_slope
    )
    spec = pl.BlockSpec((tile_rows, cols), lambda i: (i, 0))
    return pl.pallas_call(
        kernel,
        out_shape=jax.ShapeDtypeStruct((rows, cols), a2d.dtype),
        grid_spec=pl.GridSpec(grid=grid, in_specs=[spec, spec], out_specs=spec),
        compiler_params=pltpu.CompilerParams(
            dimension_semantics=("parallel",),
            vmem_limit_bytes=_VMEM_LIMIT_BYTES,
        ),
        cost_estimate=cost,
    )(a2d, b2d)


def shortcut(x0, x1, activation="leaky", negative_slope=0.1):
    """activation(x0 + x1) — x0, x1 are NCHW and must have identical shapes."""
    assert x0.shape == x1.shape and x0.dtype == x1.dtype
    if activation not in ("leaky", "linear"):
        raise ValueError(f"unsupported activation: {activation}")
    orig_shape = x0.shape
    total = x0.size

    cols = _pick_cols(total)
    if cols:
        # Common case (conv feature maps): no padding, reshape is free.
        a = x0.reshape(total // cols, cols)
        b = x1.reshape(total // cols, cols)
        out = _run_slab(a, b, activation, negative_slope)
        return out.reshape(orig_shape)

    # Rare case: element count not a multiple of 128 — pad once, slice back.
    cols_p = 1024
    rows_p = pl.cdiv(total, cols_p)
    pad = rows_p * cols_p - total
    a = jnp.pad(x0.reshape(-1), (0, pad)).reshape(rows_p, cols_p)
    b = jnp.pad(x1.reshape(-1), (0, pad)).reshape(rows_p, cols_p)
    out = _run_slab(a, b, activation, negative_slope)
    return out.reshape(-1)[:total].reshape(orig_shape)


if __name__ == "__main__":
    key = jax.random.PRNGKey(0)
    k0, k1 = jax.random.split(key)

    # NCHW, small shapes: batch=2, channels=4, spatial=16x16 (total % 128 == 0
    # -> no-pad fast path).
    x0 = jax.random.normal(k0, (2, 4, 16, 16), dtype=jnp.float32)
    x1 = jax.random.normal(k1, (2, 4, 16, 16), dtype=jnp.float32)

    out = shortcut(x0, x1, activation="leaky", negative_slope=0.1)
    jax.block_until_ready(out)

    s = x0 + x1
    ref = jnp.where(s >= 0, s, s * 0.1)
    assert out.shape == x0.shape
    assert jnp.allclose(out, ref, atol=1e-6), "mismatch vs leaky reference"

    # "linear" (identity) activation variant.
    out_lin = shortcut(x0, x1, activation="linear")
    jax.block_until_ready(out_lin)
    assert jnp.allclose(out_lin, s, atol=1e-6), "mismatch vs linear reference"

    # Odd element count (2*3*13*13 = 1014, not a multiple of 128) exercises
    # the rare padded-fallback path.
    k2, k3 = jax.random.split(k1)
    y0 = jax.random.normal(k2, (2, 3, 13, 13), dtype=jnp.float32)
    y1 = jax.random.normal(k3, (2, 3, 13, 13), dtype=jnp.float32)
    out_odd = shortcut(y0, y1, activation="leaky", negative_slope=0.1)
    jax.block_until_ready(out_odd)
    so = y0 + y1
    ref_odd = jnp.where(so >= 0, so, so * 0.1)
    assert out_odd.shape == y0.shape
    assert jnp.allclose(out_odd, ref_odd, atol=1e-6), "mismatch vs odd-size reference"

    print("KERNEL_OK")
</pallas_src>

<mosaic_0001>
module attributes {stable_mosaic.version = 11 : i64} {
  func.func @_shortcut_kernel(%arg0: i32, %arg1: memref<1x2048xf32, #tpu.memory_space<vmem>>, %arg2: memref<1x2048xf32, #tpu.memory_space<vmem>>, %arg3: memref<1x2048xf32, #tpu.memory_space<vmem>>) attributes {dimension_semantics = [#tpu.dimension_semantics<parallel>], iteration_bounds = array<i64: 1>, scalar_prefetch = 0 : i64, scratch_operands = 0 : i64, tpu.core_type = #tpu.core_type<tc>, window_params = [{transform_indices = @transform_0, window_bounds = array<i64: 1, 2048>}, {transform_indices = @transform_1, window_bounds = array<i64: 1, 2048>}, {transform_indices = @transform_2, window_bounds = array<i64: 1, 2048>}]} {
    %c0 = arith.constant 0 : index
    %c0_0 = arith.constant 0 : index
    %0 = vector.load %arg1[%c0, %c0_0] : memref<1x2048xf32, #tpu.memory_space<vmem>>, vector<1x2048xf32>
    %c0_1 = arith.constant 0 : index
    %c0_2 = arith.constant 0 : index
    %1 = vector.load %arg2[%c0_1, %c0_2] : memref<1x2048xf32, #tpu.memory_space<vmem>>, vector<1x2048xf32>
    %2 = arith.addf %0, %1 : vector<1x2048xf32>
    %cst = arith.constant 1.000000e-01 : f32
    %3 = vector.broadcast %cst : f32 to vector<1x2048xf32>
    %4 = arith.mulf %2, %3 : vector<1x2048xf32>
    %5 = arith.maximumf %2, %4 : vector<1x2048xf32>
    %c0_3 = arith.constant 0 : index
    %c0_4 = arith.constant 0 : index
    %6 = vector.load %arg3[%c0_3, %c0_4] : memref<1x2048xf32, #tpu.memory_space<vmem>>, vector<1x2048xf32>
    tpu.vector_store %arg3[%c0_3, %c0_4], %5 {strides = array<i32>} : memref<1x2048xf32, #tpu.memory_space<vmem>>, vector<1x2048xf32>,
    return
  }
  func.func @transform_0(%arg0: i32) -> (i32, i32) {
    %c0_i32 = arith.constant 0 : i32
    %c0_i32_0 = arith.constant 0 : i32
    return %arg0, %c0_i32 : i32, i32
  }
  func.func @transform_1(%arg0: i32) -> (i32, i32) {
    %c0_i32 = arith.constant 0 : i32
    %c0_i32_0 = arith.constant 0 : i32
    return %arg0, %c0_i32 : i32, i32
  }
  func.func @transform_2(%arg0: i32) -> (i32, i32) {
    %c0_i32 = arith.constant 0 : i32
    %c0_i32_0 = arith.constant 0 : i32
    return %arg0, %c0_i32 : i32, i32
  }
}

</mosaic_0001>

<bundles_post_ra>
// kernel: tpu_custom_call.1
= control target key start
LH: loop header
LB: loop body
LE: loop exit
PB: predicated region body
PF: predicated region fallthrough
CT: control target
= control target key end

     0   :  { %7 = vsyncpa [#allocation3], 0  ;;  %s160_s0 = inlined_call_operand.hbm [shape: f32[1,2048], index: 0, kind: input, shape index: {}]   ;;  %s161_s1 = inlined_call_operand.hbm [shape: f32[1,2048], index: 1, kind: input, shape index: {}]   ;;  %s162_s2 = inlined_call_operand.hbm [shape: f32[1,2048], index: 2, kind: output, shape index: {}]  }
   0x1   :  { %8 = vsyncpa [#allocation6], 0 }
   0x2   :  { %9 = vsyncpa [#allocation4], 0  ;;  %s133_s9 = smov [#allocation2]   ;;  %s134_s11 = smov [#allocation5]  }
   0x3   :  { %s16_s10 = sshll.u32 %s133_s9, 4  ;;  %s26_s12 = sshll.u32 %s134_s11, 4  ;;  %s17_s10 = int_to_ptr.vmem [resolvable:$true] %s16_s10  ;;  %s27_s12 = int_to_ptr.vmem [resolvable:$true] %s26_s12 }
   0x4   :  { %s75_s13 = scalar_lea.vmem %s17_s10, 256  ;;  %p80_p1 = scmp.lt.s32.totalorder %s17_s10, %s17_s10 }
   0x5   :  { %p76_p0 = scmp.ne.s32.totalorder %s17_s10, %s75_s13  ;;  %p81_p2 = scmp.lt.s32.totalorder %s75_s13, %s75_s13 }
   0x7   :  { %p82_p3 = por %p81_p2, %p80_p1 }
   0x9   :  { %p83_p4 = pnand %p82_p3, %p76_p0 }
   0xb   :  { %86 = shalt.err (!%p83_p4)
}
   0xc   :  { %19 = dma.hbm_to_vmem [thread:$0]  %s160_s0, 256, %s17_s10, [#allocation3]  }
   0xd   :  { %s95_s16 = scalar_lea.vmem %s27_s12, 256  ;;  %p100_p6 = scmp.lt.s32.totalorder %s27_s12, %s27_s12 }
   0xe   :  { %p96_p5 = scmp.ne.s32.totalorder %s27_s12, %s95_s16  ;;  %p101_p7 = scmp.lt.s32.totalorder %s95_s16, %s95_s16 }
  0x10   :  { %p102_p8 = por %p101_p7, %p100_p6 }
  0x12   :  { %p103_p9 = pnand %p102_p8, %p96_p5 }
  0x14   :  { %106 = shalt.err (!%p103_p9)
}
  0x15   :  { %29 = dma.hbm_to_vmem [thread:$0]  %s161_s1, 256, %s27_s12, [#allocation6]  }
  0x16   :  { %127 = dma.done.wait [#allocation3], 256  }
  0x17   :  { %128 = vsyncadd [#allocation3], 4294967040 }
  0x18   :  { %129 = dma.done.wait [#allocation6], 256  }
  0x19   :  { %130 = vsyncadd [#allocation6], 4294967040  ;;  %v36_v0 = vld [vmem:[#allocation2] sm:$0xff]  ;;  %v38_v1 = vld [vmem:[#allocation5] sm:$0xff]  ;;  %s135_s0 = smov [#allocation7]  }
  0x1a   :  { %v37_v2 = vld [vmem:[#allocation2 + $0x8] sm:$0xff]  ;;  %v40_v3 = vadd.f32 %v38_v1, %v36_v0  ;;  %v39_v4 = vld [vmem:[#allocation5 + $0x8] sm:$0xff]  ;;  %s54_s19 = sshll.u32 %s135_s0, 4  ;;  %s55_s19 = int_to_ptr.vmem [resolvable:$true] %s54_s19 }
  0x1b   :  { %v41_v5 = vadd.f32 %v39_v4, %v37_v2  ;;  %s107_s1 = scalar_lea.vmem %s55_s19, 256  ;;  %p112_p11 = scmp.lt.s32.totalorder %s55_s19, %s55_s19 }
  0x1c   :  { %v42_v6 = vmul.f32 0.1, %v40_v3  ;;  %p108_p10 = scmp.ne.s32.totalorder %s55_s19, %s107_s1  ;;  %p113_p12 = scmp.lt.s32.totalorder %s107_s1, %s107_s1 }
  0x1d   :  { %v43_v7 = vmul.f32 0.1, %v41_v5 }
  0x1e   :  { %v44_v8 = vmax.f32 %v40_v3, %v42_v6  ;;  %p114_p13 = por %p113_p12, %p112_p11 }
  0x1f   :  { %v45_v9 = vmax.f32 %v41_v5, %v43_v7 }
  0x20   :  { %46 = vst [vmem:[#allocation7] sm:$0xff] %v44_v8  ;;  %p115_p0 = pnand %p114_p13, %p108_p10 }
  0x21   :  { %47 = vst [vmem:[#allocation7 + $0x8] sm:$0xff] %v45_v9 }
  0x22   :  { %118 = shalt.err (!%p115_p0)
}
  0x23   :  { %57 = dma.vmem_to_hbm [thread:$0]  %s55_s19, 256, %s162_s2, [#allocation4]  }
  0x24   :  { %131 = dma.done.wait [#allocation4], 256  }
  0x25   :  { %132 = vsyncadd [#allocation4], 4294967040 }
  0x26   :  { %61 = vsyncpa [#allocation3], 1 }
  0x27   :  { %62 = vsyncpa [#allocation6], 1 }
  0x28   :  { %63 = vsyncpa [#allocation4], 1 }

</bundles_post_ra>
